<compile_context>
chip_gen: v6e
topology: v6e:2x2x1
jax: 0.10.0
libtpu: 0.0.40
codegen_flags: <defaults>
</compile_context>

<pallas_src>
import functools

import jax
import jax.numpy as jnp
from jax.experimental import pallas as pl
from jax.experimental.pallas import tpu as pltpu


# --------------------------------------------------------------------------
# Helpers
# --------------------------------------------------------------------------
def _round_up(x: int, m: int) -> int:
    return (x + m - 1) // m * m


def _sublane_pack(itemsize: int) -> int:
    # sublanes per vreg for this dtype: 8 (f32), 16 (bf16), 32 (int8)
    return 8 * max(1, 4 // itemsize)


def _tpu_params():
    """(vmem_capacity_bytes, num_tensorcores) with conservative fallbacks."""
    vmem_cap = 64 << 20          # conservative: v7x physical VMEM
    num_cores = 1
    try:
        info = pltpu.get_tpu_info()
        v = getattr(info, "vmem_capacity_bytes", None)
        if v:
            vmem_cap = int(v)
        for name in ("num_tensorcores", "tensorcore_count",
                     "num_cores", "core_count"):
            nv = getattr(info, name, None)
            if nv:
                num_cores = int(nv)
                break
    except Exception:
        pass
    try:
        kind = jax.devices()[0].device_kind.lower()
        if "v7" in kind:
            num_cores = max(num_cores, 2)
    except Exception:
        pass
    return vmem_cap, num_cores


def _pick_batch_block(b: int, per_batch_bytes: int, budget: int,
                      num_cores: int) -> int:
    """Largest divisor of B whose double-buffered in+out working set fits the
    budget; on multi-core chips prefer grid lengths that split evenly across
    TensorCores (balanced 'parallel' sharding)."""
    tb_cap = max(1, min(b, budget // max(per_batch_bytes, 1)))
    divisors = [d for d in range(1, b + 1) if b % d == 0 and d <= tb_cap]
    if num_cores > 1:
        balanced = [d for d in divisors if (b // d) % num_cores == 0]
        if balanced:
            return max(balanced)
    return max(divisors)


def _gate_from_pooled(pooled, w_ref, k_size: int):
    """Conv1d(1,1,k,pad=(k-1)//2,bias=False) over channels + sigmoid. f32."""
    c = pooled.shape[1]
    pad = (k_size - 1) // 2
    padded = jnp.pad(pooled, ((0, 0), (pad, pad)))        # (tb, C + 2*pad)
    y = jnp.zeros_like(pooled)
    for j in range(k_size):
        y = y + w_ref[j] * padded[:, j:j + c]             # static slices
    return jax.nn.sigmoid(y)                              # (tb, C), f32


# --------------------------------------------------------------------------
# Kernels
# --------------------------------------------------------------------------
def _eca_kernel(w_ref, x_ref, o_ref, *, k_size: int, inv_hw: float):
    """Single-pass: one (TB, C, HW) block per grid step.

    w_ref : SMEM (k_size,) f32       -- conv taps (scalar-prefetched)
    x_ref : VMEM (TB, C, HW) native  -- input tile (full C and HW)
    o_ref : VMEM (TB, C, HW) native  -- output tile
    """
    # Global average pool over the spatial (lane) axis, accumulated in f32.
    pooled = jnp.sum(x_ref[...], axis=-1, dtype=jnp.float32) * jnp.float32(inv_hw)
    # Tiny channel conv + sigmoid in f32; gate cast once to the tile dtype.
    gate = _gate_from_pooled(pooled, w_ref, k_size).astype(o_ref.dtype)[:, :, None]
    # Re-index the ref for the streaming multiply (keeps vreg pressure low).
    o_ref[...] = (x_ref[...] * gate).astype(o_ref.dtype)


def _pool_gate_kernel(w_ref, x_ref, gate_ref, acc_ref, *,
                      k_size: int, inv_hw: float, hw: int, thw: int,
                      needs_mask: bool):
    """Two-pass fallback, pass 1: spatially tiled pool -> (1, C, 1) gate."""
    j = pl.program_id(1)

    @pl.when(j == 0)
    def _init():
        acc_ref[...] = jnp.zeros_like(acc_ref)

    x = x_ref[...]                                        # (1, C, thw) native
    if needs_mask:
        lane = jax.lax.broadcasted_iota(jnp.int32, (1, 1, thw), 2)
        valid = (j * thw + lane) < hw
        x = jnp.where(valid, x, jnp.zeros_like(x))
    acc_ref[...] += jnp.sum(x, axis=-1, dtype=jnp.float32)

    @pl.when(j == pl.num_programs(1) - 1)
    def _finalize():
        pooled = acc_ref[...] * jnp.float32(inv_hw)       # (1, C) f32
        gate_ref[...] = _gate_from_pooled(pooled, w_ref, k_size)[:, :, None]


def _gating_kernel(gate_ref, x_ref, o_ref):
    """Two-pass fallback, pass 2: spatially tiled x * gate."""
    gate = gate_ref[...].astype(o_ref.dtype)              # (1, C, 1)
    o_ref[...] = (x_ref[...] * gate).astype(o_ref.dtype)


# --------------------------------------------------------------------------
# Wrapper
# --------------------------------------------------------------------------
def eca_forward(x, conv_weight, k_size: int = 3, *,
                donate_input: bool = False,
                _force_two_pass: bool = False,
                _spatial_tile=None):
    """ECA forward. x: (B, C, H, W) f32/bf16; conv_weight: (k_size,) f32.

    donate_input=True aliases the input HBM buffer to the output (use only if
    the caller no longer needs x).  With no wrapper padding the alias now hits
    the caller's actual buffer.
    """
    assert k_size % 2 == 1, "ECA uses odd k_size ('same' Conv1d padding)"
    b, c, h, w = x.shape
    hw = h * w
    conv_weight = conv_weight.astype(jnp.float32)
    x_flat = x.reshape(b, c, hw)

    itemsize = jnp.dtype(x.dtype).itemsize
    vmem_cap, num_cores = _tpu_params()
    # ~40-48 MiB of double-buffered in+out working set, generation-aware.
    budget = max(8 << 20, min(48 << 20, (vmem_cap * 3) // 5))

    # Conservative VMEM footprint per batch element (account for the sublane /
    # lane padding Mosaic applies to the (C, HW) tile).
    c_pad = _round_up(c, _sublane_pack(itemsize))
    hw_pad = _round_up(hw, 128)
    per_batch = 4 * c_pad * hw_pad * itemsize         # in+out, double-buffered

    two_pass = _force_two_pass or per_batch > budget

    if not two_pass:
        # ----- single pass: pool + conv + sigmoid + gate, one HBM read/write
        tb = _pick_batch_block(b, per_batch, budget, num_cores)
        block_bytes = tb * per_batch
        vmem_limit = int(min(vmem_cap, max(32 << 20, block_bytes + (8 << 20))))

        kernel = functools.partial(_eca_kernel, k_size=k_size, inv_hw=1.0 / hw)
        out_flat = pl.pallas_call(
            kernel,
            out_shape=jax.ShapeDtypeStruct((b, c, hw), x.dtype),
            grid_spec=pltpu.PrefetchScalarGridSpec(
                num_scalar_prefetch=1,              # conv taps land in SMEM
                grid=(b // tb,),
                in_specs=[
                    pl.BlockSpec((tb, c, hw), lambda i, w_ref: (i, 0, 0)),
                ],
                out_specs=pl.BlockSpec((tb, c, hw), lambda i, w_ref: (i, 0, 0)),
            ),
            compiler_params=pltpu.CompilerParams(
                dimension_semantics=("parallel",),
                vmem_limit_bytes=vmem_limit),
            input_output_aliases=({1: 0} if donate_input else {}),
        )(conv_weight, x_flat)
        return out_flat.reshape(b, c, h, w)

    # ----- two-pass fallback: C*HW too large for one resident tile (v7x VMEM)
    # Pick a spatial tile so pass-2's double-buffered in+out fits the budget.
    if _spatial_tile is not None:
        thw = int(_spatial_tile)
    else:
        thw_cap = budget // max(1, 4 * c_pad * itemsize)
        thw = max(128, (thw_cap // 128) * 128)
    if thw >= hw:
        thw = hw                                      # full dim -> always legal
    n_hw = pl.cdiv(hw, thw)
    needs_mask = (hw % thw) != 0
    thw_pad = _round_up(thw, 128)

    # Pass 1: pool + channel conv + sigmoid -> (B, C, 1) f32 gate.
    gate = pl.pallas_call(
        functools.partial(_pool_gate_kernel, k_size=k_size, inv_hw=1.0 / hw,
                          hw=hw, thw=thw, needs_mask=needs_mask),
        out_shape=jax.ShapeDtypeStruct((b, c, 1), jnp.float32),
        grid_spec=pltpu.PrefetchScalarGridSpec(
            num_scalar_prefetch=1,
            grid=(b, n_hw),                           # spatial axis last (reduction)
            in_specs=[
                pl.BlockSpec((1, c, thw), lambda i, j, w_ref: (i, 0, j)),
            ],
            out_specs=pl.BlockSpec((1, c, 1), lambda i, j, w_ref: (i, 0, 0)),
            scratch_shapes=[pltpu.VMEM((1, c), jnp.float32)],
        ),
        compiler_params=pltpu.CompilerParams(
            dimension_semantics=("parallel", "arbitrary"),
            vmem_limit_bytes=int(min(vmem_cap, max(
                32 << 20, 2 * c_pad * thw_pad * itemsize + (8 << 20)))),
        ),
    )(conv_weight, x_flat)

    # Pass 2: spatially tiled gating multiply (both grid axes 'parallel').
    out_flat = pl.pallas_call(
        _gating_kernel,
        out_shape=jax.ShapeDtypeStruct((b, c, hw), x.dtype),
        grid=(b, n_hw),
        in_specs=[
            pl.BlockSpec((1, c, 1), lambda i, j: (i, 0, 0)),
            pl.BlockSpec((1, c, thw), lambda i, j: (i, 0, j)),
        ],
        out_specs=pl.BlockSpec((1, c, thw), lambda i, j: (i, 0, j)),
        compiler_params=pltpu.CompilerParams(
            dimension_semantics=("parallel", "parallel"),
            vmem_limit_bytes=int(min(vmem_cap, max(
                32 << 20, 4 * c_pad * thw_pad * itemsize + (8 << 20)))),
        ),
        input_output_aliases=({1: 0} if donate_input else {}),
    )(gate, x_flat)
    return out_flat.reshape(b, c, h, w)


# --------------------------------------------------------------------------
# Pure-JAX reference
# --------------------------------------------------------------------------
def eca_reference(x, conv_weight, k_size: int = 3):
    """Pure-JAX f32 reference mirroring the PyTorch forward."""
    pad = (k_size - 1) // 2
    xf = x.astype(jnp.float32)
    pooled = jnp.mean(xf, axis=(2, 3))                      # (B, C)
    padded = jnp.pad(pooled, ((0, 0), (pad, pad)))          # (B, C + 2*pad)
    c = x.shape[1]
    y = sum(conv_weight[j] * padded[:, j:j + c] for j in range(k_size))
    gate = jax.nn.sigmoid(y)                                # (B, C)
    return xf * gate[:, :, None, None]


if __name__ == "__main__":
    key = jax.random.PRNGKey(0)
    k_x, k_w = jax.random.split(key)

    B, C, H, W = 2, 4, 16, 16
    K_SIZE = 3

    # Conv1d(1, 1, 3, bias=False) weight, shape (1, 1, 3) in torch -> (3,).
    bound = 1.0 / (K_SIZE ** 0.5)
    conv_w = jax.random.uniform(k_w, (K_SIZE,), jnp.float32, -bound, bound)

    # --- float32, aligned HW, single-pass path ---
    x32 = jax.random.normal(k_x, (B, C, H, W), dtype=jnp.float32)
    out32 = jax.block_until_ready(eca_forward(x32, conv_w, k_size=K_SIZE))
    ref32 = eca_reference(x32, conv_w, k_size=K_SIZE)
    assert out32.shape == x32.shape and out32.dtype == x32.dtype
    assert jnp.allclose(out32, ref32, atol=1e-5, rtol=1e-5)

    # --- float32, unaligned HW (63) -> masked tail store, no wrapper padding ---
    xu = jax.random.normal(k_x, (2, 8, 7, 9), dtype=jnp.float32)
    outu = jax.block_until_ready(eca_forward(xu, conv_w, k_size=K_SIZE))
    refu = eca_reference(xu, conv_w, k_size=K_SIZE)
    assert outu.shape == xu.shape
    assert jnp.allclose(outu, refu, atol=1e-5, rtol=1e-5)

    # --- bfloat16, single-pass path ---
    x16 = x32.astype(jnp.bfloat16)
    out16 = jax.block_until_ready(eca_forward(x16, conv_w, k_size=K_SIZE))
    ref16 = eca_reference(x16, conv_w, k_size=K_SIZE)
    assert out16.shape == x16.shape and out16.dtype == jnp.bfloat16
    assert jnp.allclose(out16.astype(jnp.float32), ref16, atol=3e-2, rtol=3e-2)

    # --- forced two-pass fallback (spatially tiled, masked partial tile) ---
    xl = jax.random.normal(k_x, (2, 8, 10, 20), dtype=jnp.float32)  # HW=200
    outl = jax.block_until_ready(
        eca_forward(xl, conv_w, k_size=K_SIZE,
                    _force_two_pass=True, _spatial_tile=128))
    refl = eca_reference(xl, conv_w, k_size=K_SIZE)
    assert outl.shape == xl.shape
    assert jnp.allclose(outl, refl, atol=1e-5, rtol=1e-5)

    print("KERNEL_OK")
</pallas_src>

<mosaic_0001>
module attributes {stable_mosaic.version = 11 : i64} {
  func.func @_eca_kernel(%arg0: i32, %arg1: memref<3xf32, #tpu.memory_space<smem>>, %arg2: memref<2x4x256xf32, #tpu.memory_space<vmem>>, %arg3: memref<2x4x256xf32, #tpu.memory_space<vmem>>) attributes {dimension_semantics = [#tpu.dimension_semantics<parallel>], iteration_bounds = array<i64: 1>, scalar_prefetch = 1 : i64, scratch_operands = 0 : i64, tpu.core_type = #tpu.core_type<tc>, window_params = [{transform_indices = @transform_0, window_bounds = array<i64: 2, 4, 256>}, {transform_indices = @transform_1, window_bounds = array<i64: 2, 4, 256>}]} {
    %c0 = arith.constant 0 : index
    %c0_0 = arith.constant 0 : index
    %c0_1 = arith.constant 0 : index
    %0 = vector.load %arg2[%c0, %c0_0, %c0_1] : memref<2x4x256xf32, #tpu.memory_space<vmem>>, vector<2x4x256xf32>
    %cst = arith.constant dense<0.000000e+00> : vector<2x4xf32>
    %1 = vector.multi_reduction <add>, %0, %cst [2] : vector<2x4x256xf32> to vector<2x4xf32>
    %cst_2 = arith.constant 3.906250e-03 : f32
    %2 = vector.broadcast %cst_2 : f32 to vector<2x4xf32>
    %3 = arith.mulf %1, %2 : vector<2x4xf32>
    %c0_i32 = arith.constant 0 : i32
    %4 = arith.sitofp %c0_i32 : i32 to f32
    %5 = vector.broadcast %4 : f32 to vector<2x1xf32>
    %6 = tpu.concatenate %5, %3 in 1 : vector<2x1xf32>, vector<2x4xf32> -> vector<2x5xf32>
    %7 = vector.broadcast %4 : f32 to vector<2x1xf32>
    %8 = tpu.concatenate %6, %7 in 1 : vector<2x5xf32>, vector<2x1xf32> -> vector<2x6xf32>
    %cst_3 = arith.constant 0.000000e+00 : f32
    %9 = vector.broadcast %cst_3 : f32 to vector<2x4xf32>
    %c0_4 = arith.constant 0 : index
    %10 = memref.load %arg1[%c0_4] : memref<3xf32, #tpu.memory_space<smem>>
    %11 = vector.extract_strided_slice %8 {offsets = [0, 0], sizes = [2, 4], strides = [1, 1]} : vector<2x6xf32> to vector<2x4xf32>
    %12 = vector.broadcast %10 : f32 to vector<2x4xf32>
    %13 = arith.mulf %12, %11 : vector<2x4xf32>
    %14 = arith.addf %9, %13 : vector<2x4xf32>
    %c1 = arith.constant 1 : index
    %15 = memref.load %arg1[%c1] : memref<3xf32, #tpu.memory_space<smem>>
    %16 = vector.extract_strided_slice %8 {offsets = [0, 1], sizes = [2, 4], strides = [1, 1]} : vector<2x6xf32> to vector<2x4xf32>
    %17 = vector.broadcast %15 : f32 to vector<2x4xf32>
    %18 = arith.mulf %17, %16 : vector<2x4xf32>
    %19 = arith.addf %14, %18 : vector<2x4xf32>
    %c2 = arith.constant 2 : index
    %20 = memref.load %arg1[%c2] : memref<3xf32, #tpu.memory_space<smem>>
    %21 = vector.extract_strided_slice %8 {offsets = [0, 2], sizes = [2, 4], strides = [1, 1]} : vector<2x6xf32> to vector<2x4xf32>
    %22 = vector.broadcast %20 : f32 to vector<2x4xf32>
    %23 = arith.mulf %22, %21 : vector<2x4xf32>
    %24 = arith.addf %19, %23 : vector<2x4xf32>
    %25 = arith.negf %24 : vector<2x4xf32>
    %26 = math.exp %25 : vector<2x4xf32>
    %cst_5 = arith.constant 1.000000e+00 : f32
    %27 = vector.broadcast %cst_5 : f32 to vector<2x4xf32>
    %28 = arith.addf %27, %26 : vector<2x4xf32>
    %29 = arith.divf %27, %28 : vector<2x4xf32>
    %30 = vector.shape_cast %29 : vector<2x4xf32> to vector<2x4x1xf32>
    %c0_6 = arith.constant 0 : index
    %c0_7 = arith.constant 0 : index
    %c0_8 = arith.constant 0 : index
    %31 = vector.load %arg2[%c0_6, %c0_7, %c0_8] : memref<2x4x256xf32, #tpu.memory_space<vmem>>, vector<2x4x256xf32>
    %32 = vector.broadcast %30 : vector<2x4x1xf32> to vector<2x4x256xf32>
    %33 = arith.mulf %31, %32 : vector<2x4x256xf32>
    %c0_9 = arith.constant 0 : index
    %c0_10 = arith.constant 0 : index
    %c0_11 = arith.constant 0 : index
    %34 = vector.load %arg3[%c0_9, %c0_10, %c0_11] : memref<2x4x256xf32, #tpu.memory_space<vmem>>, vector<2x4x256xf32>
    tpu.vector_store %arg3[%c0_9, %c0_10, %c0_11], %33 {strides = array<i32>} : memref<2x4x256xf32, #tpu.memory_space<vmem>>, vector<2x4x256xf32>,
    return
  }
  func.func @transform_0(%arg0: i32, %arg1: memref<3xf32, #tpu.memory_space<smem>>) -> (i32, i32, i32) {
    %c0_i32 = arith.constant 0 : i32
    %c0_i32_0 = arith.constant 0 : i32
    %c0_i32_1 = arith.constant 0 : i32
    return %arg0, %c0_i32, %c0_i32_0 : i32, i32, i32
  }
  func.func @transform_1(%arg0: i32, %arg1: memref<3xf32, #tpu.memory_space<smem>>) -> (i32, i32, i32) {
    %c0_i32 = arith.constant 0 : i32
    %c0_i32_0 = arith.constant 0 : i32
    %c0_i32_1 = arith.constant 0 : i32
    return %arg0, %c0_i32, %c0_i32_0 : i32, i32, i32
  }
}

</mosaic_0001>

<bundles_post_ra>
// kernel: tpu_custom_call.1
= control target key start
LH: loop header
LB: loop body
LE: loop exit
PB: predicated region body
PF: predicated region fallthrough
CT: control target
= control target key end

     0   :  { %s219_s9 = smov [#allocation3]   ;;  %s269_s0 = inlined_call_operand.hbm [shape: f32[3], index: 0, kind: input, shape index: {}]   ;;  %s270_s1 = inlined_call_operand.hbm [shape: f32[2,4,256], index: 1, kind: input, shape index: {}]   ;;  %s271_s2 = inlined_call_operand.hbm [shape: f32[2,4,256], index: 2, kind: output, shape index: {}]  }
   0x1   :  { %8 = dma.hbm_to_smem %s269_s0, 16, %s219_s9, [#allocation2] }
   0x2   :  { %213 = dma.done.wait [#allocation2], 16 }
   0x3   :  { %214 = vsyncadd [#allocation2], 4294967280 }
   0x4   :  { %10 = sfence }
   0x5   :  { %11 = vsyncpa [#allocation5], 0 }
   0x6   :  { %12 = vsyncpa [#allocation6], 0  ;;  %s220_s12 = smov [#allocation4]  }
   0x7   :  { %s18_s13 = sshll.u32 %s220_s12, 4  ;;  %s19_s13 = int_to_ptr.vmem [resolvable:$true] %s18_s13 }
   0x8   :  { %s181_s14 = scalar_lea.vmem %s19_s13, 256  ;;  %p186_p1 = scmp.lt.s32.totalorder %s19_s13, %s19_s13 }
   0x9   :  { %p182_p0 = scmp.ne.s32.totalorder %s19_s13, %s181_s14  ;;  %p187_p2 = scmp.lt.s32.totalorder %s181_s14, %s181_s14 }
   0xb   :  { %p188_p3 = por %p187_p2, %p186_p1 }
   0xd   :  { %p189_p4 = pnand %p188_p3, %p182_p0 }
   0xf   :  { %192 = shalt.err (!%p189_p4)
}
  0x10   :  { %s221_s15 = smov 128   ;;  %s222_s16 = smov 8  }
  0x11   :  { %24 = dma.hbm_to_vmem [thread:$0]  %s270_s1, 256, %s19_s13, [#allocation5], %s221_s15, %s221_s15, %s222_s16  }
  0x12   :  { %215 = dma.done.wait [#allocation5], 256  }
  0x13   :  { %216 = vsyncadd [#allocation5], 4294967040  ;;  %vm36_vm0 = vcmask 1043456   ;;  %v251_v0 = vld [vmem:[#allocation4] sm:$0xff]  ;;  %v253_v1 = vld [vmem:[#allocation4 + $0x8] sm:$0xff]  ;;  %v51_v10 = vlaneseq  ;;  %s148_s1 = sld [smem:[#allocation3 + $0x1]] }
  0x14   :  { %v32_v2 = vcombine.high %v251_v0, %v251_v0  ;;  %v37_v3 = vsel %vm36_vm0, %v251_v0, 0.0  ;;  %v33_v4 = vcombine.high %v253_v1, %v253_v1  ;;  %v42_v6 = vsel %vm36_vm0, %v253_v1, 0.0  ;;  %s149_s18 = sld [smem:[#allocation3 + $0x2]]  ;;  %s223_s19 = smov 127  }
  0x15   :  { %v52_v11 = vand.u32 127, %v51_v10  ;;  %v55_v13 = vshrl.u32 %v51_v10, 7  ;;  %vm62_vm1 = vcmask 1041409   ;;  %vm65_vm2 = vcmask 7168   ;;  %s224_s20 = smov 126   ;;  %s69_s21 = sld [smem:[#allocation3]] }
  0x16   :  { %v38_v5 = vsel %vm36_vm0, %v32_v2, 0.0  ;;  %v43_v7 = vsel %vm36_vm0, %v33_v4, 0.0  ;;  %vm67_vm3 = vcmask 39936   ;;  %v225_v42 = vmov 839922192   ;;  %s226_s22 = smov [#allocation7]  }
  0x17   :  { %v39_v8 = vadd.f32 %v38_v5, %v37_v3  ;;  %v44_v9 = vadd.f32 %v43_v7, %v42_v6  ;;  %v53_v12 = vadd.s32 4294967295, %v52_v11  ;;  %v104_v37 = vsub.s32 1, %v55_v13  ;;  %s136_s23 = sshll.u32 %s226_s22, 4  ;;  %s137_s23 = int_to_ptr.vmem [resolvable:$true] %s136_s23 }
  0x18   :  { %v97_v38 = vsub.s32 0, %v55_v13  ;;  %v112_v43 = vunpack.c.l.s4 %v225_v42  ;;  %s193_s24 = scalar_lea.vmem %s137_s23, 256  ;;  %p198_p6 = scmp.lt.s32.totalorder %s137_s23, %s137_s23 }
  0x19   :  { %40 = vadd.xlane.f32.xlu0 %v39_v8  ;;  %v56_v15 = vsub.s32 %v53_v12, %v55_v13  ;;  %v74_v22 = vstv %s148_s1  ;;  %p194_p5 = scmp.ne.s32.totalorder %s137_s23, %s193_s24  ;;  %p199_p7 = scmp.lt.s32.totalorder %s193_s24, %s193_s24 }
  0x1a   :  { %v82_v26 = vstv %s149_s18  ;;  %v113_v44 = vunpack.c.0.s8 %v112_v43 }
  0x1b   :  { %v70_v28 = vstv %s69_s21  ;;  %p200_p8 = por %p199_p7, %p198_p6 }
  0x1c   :  { %v116_v45 = vsub.s32 %v113_v44, %v55_v13 }
  0x1d   :  { %45 = vadd.xlane.f32.xlu0 %v44_v9  ;;  %p201_p9 = pnand %p200_p8, %p194_p5 }
  0xa2   :  { %v41_v14 = vpop.xlane.xlu0 %40 }
  0xa3   :  { %v47_v16 = vmul.f32 0.00390625, %v41_v14 }
  0xa5   :  { %v57_v19 = vrot.slane %v47_v16, %v56_v15 }
  0xa6   :  { %v46_v17 = vpop.xlane.xlu0 %45 }
  0xa7   :  { %v48_v18 = vmul.f32 0.00390625, %v46_v17 }
  0xa9   :  { %v61_v20 = vrot.slane %v48_v18, %v56_v15 }
  0xab   :  { %v63_v21 = vsel %vm62_vm1, %v61_v20, %v57_v19 }
  0xac   :  { %v66_v23 = vsel %vm65_vm2, 0.0, %v63_v21 }
  0xad   :  { %v68_v24 = vsel %vm67_vm3, %v66_v23, 0.0 }
  0xae   :  { %v75_v25 = vmul.f32 %v74_v22, %v68_v24  ;;  %v83_v27 = vmul.f32 %v82_v26, %v68_v24  ;;  %v71_v30 = vmul.f32 %v70_v28, %v68_v24 }
  0xb0   :  { %77 = vrot.lane.b32.xlu1 %v75_v25, %s223_s19 }
  0xb4   :  { %85 = vrot.lane.b32.xlu1 %v83_v27, %s224_s20 }
 0x122   :  { %v78_v29 = vpop.permute.xlu1 %77 }
 0x123   :  { %v80_v31 = vadd.f32 %v78_v29, %v71_v30 }
 0x126   :  { %v86_v32 = vpop.permute.xlu1 %85 }
 0x127   :  { %v88_v33 = vadd.f32 %v86_v32, %v80_v31 }
 0x129   :  { %v150_v34 = vmul.f32 -1.442695, %v88_v33 }
 0x12b   :  { %161 = vpow2.f32 %v150_v34 }
 0x138   :  { %v162_v35 = vpop.eup %161 }
 0x139   :  { %v92_v36 = vadd.f32 1.0, %v162_v35 }
 0x13b   :  { %163 = vrcp.f32 %v92_v36 }
 0x148   :  { %v164_v39 = vpop.eup %163 }
 0x149   :  { %v105_v40 = vrot.slane %v164_v39, %v104_v37  ;;  %v98_v41 = vrot.slane %v164_v39, %v97_v38 }
 0x14b   :  { %107 = vbcast.lane.b32.xlu1 %v105_v40, 256  ;;  %100 = vbcast.lane.b32.xlu0 %v98_v41, 256 }
 0x1bd   :  { %v108_v46 = vpop.permute.xlu1 %107  ;;  %v101_v47 = vpop.permute.xlu0 %100 }
 0x1be   :  { %v124_v48 = vrot.slane %v108_v46, %v116_v45  ;;  %v117_v49 = vrot.slane %v101_v47, %v116_v45 }
 0x1c0   :  { %v128_v50 = vmul.f32 %v124_v48, %v253_v1  ;;  %v127_v51 = vmul.f32 %v117_v49, %v251_v0 }
 0x1c2   :  { %130 = vst [vmem:[#allocation7 + $0x8] sm:$0xff] %v128_v50  ;;  %129 = vst [vmem:[#allocation7] sm:$0xff] %v127_v51 }
 0x1c3   :  { %204 = shalt.err (!%p201_p9)
}
 0x1c4   :  { %142 = dma.vmem_to_hbm [thread:$0]  %s137_s23, 256, %s271_s2, [#allocation6], %s221_s15, %s221_s15, %s222_s16  }
 0x1c5   :  { %217 = dma.done.wait [#allocation6], 256  }
 0x1c6   :  { %218 = vsyncadd [#allocation6], 4294967040 }
 0x1c7   :  { %146 = vsyncpa [#allocation5], 1 }
 0x1c8   :  { %147 = vsyncpa [#allocation6], 1 }

</bundles_post_ra>
